<compile_context>
chip_gen: v6e
topology: v6e:2x2x1
jax: 0.10.0
libtpu: 0.0.40
codegen_flags: <defaults>
</compile_context>

<pallas_src>
import functools
import math

import jax
import jax.numpy as jnp
from jax import lax
from jax.experimental import pallas as pl
from jax.experimental.pallas import tpu as pltpu


def _round_up(x, m):
    return ((x + m - 1) // m) * m


def _channel_mix_kernel(x_ref, w_ref, b_ref, o_ref, *, use_mxu):
    """x_ref: (C, TM), w_ref: (O, C), b_ref: (O, 1), o_ref: (O, TM) — all f32."""
    x = x_ref[...]          # (C, TM)   lane-dense tile of rows
    w = w_ref[...]          # (O, C)    resident weights
    if use_mxu:
        # Large channel/out dims: use the MXU.
        out = lax.dot_general(
            w, x,
            dimension_numbers=(((1,), (0,)), ((), ())),
            preferred_element_type=jnp.float32,
        )                   # (O, TM)
    else:
        # Tiny contraction: unrolled per-channel broadcast-FMA on the VPU.
        # out[o, m] = sum_c w[o, c] * x[c, m]
        n_chan = x_ref.shape[0]
        out = w[:, 0:1] * x[0:1, :]                 # (O, TM)
        for c in range(1, n_chan):
            out = out + w[:, c:c + 1] * x[c:c + 1, :]
    o_ref[...] = out + b_ref[...]                   # bias broadcast over lanes


def channel_mix(x, chan_mix, bias, *, block_m=2048):
    """x: (..., n_chan, 1), chan_mix: (out_dim, n_chan), bias: (out_dim,)."""
    *lead, n_chan, trail = x.shape
    if trail != 1:
        raise ValueError("expected x[..., n_chan, 1] per the broadcast in forward()")
    out_dim, n_chan_w = chan_mix.shape
    assert n_chan_w == n_chan, "chan_mix / x channel mismatch"

    M = math.prod(lead)  # == 1 if lead is empty

    # Lane-dense presentation: channels on sublanes, rows on lanes.
    x_t = jnp.transpose(x.reshape(M, n_chan)).astype(jnp.float32)   # (C, M)

    # Tile the lane axis; pad M up to a multiple of the tile (128-aligned).
    tm = min(block_m, _round_up(max(M, 1), 128))
    m_pad = _round_up(max(M, 1), tm)
    if m_pad != M:
        x_t = jnp.pad(x_t, ((0, 0), (0, m_pad - M)))

    w = chan_mix.astype(jnp.float32)                                # (O, C)
    b = bias.reshape(out_dim, 1).astype(jnp.float32)                # (O, 1)

    use_mxu = (n_chan >= 128) and (out_dim >= 128)
    kernel = functools.partial(_channel_mix_kernel, use_mxu=use_mxu)

    grid = (m_pad // tm,)
    out_t = pl.pallas_call(
        kernel,
        out_shape=jax.ShapeDtypeStruct((out_dim, m_pad), jnp.float32),
        grid=grid,
        in_specs=[
            pl.BlockSpec((n_chan, tm), lambda i: (0, i)),        # x tile (lane-dense)
            pl.BlockSpec((out_dim, n_chan), lambda i: (0, 0)),   # W, resident
            pl.BlockSpec((out_dim, 1), lambda i: (0, 0)),        # bias, resident
        ],
        out_specs=pl.BlockSpec((out_dim, tm), lambda i: (0, i)),
        compiler_params=pltpu.CompilerParams(
            dimension_semantics=("parallel",),   # shard M across TCs on v7x
        ),
        cost_estimate=pl.CostEstimate(
            flops=2 * m_pad * n_chan * out_dim,
            transcendentals=0,
            bytes_accessed=4 * (m_pad * n_chan + out_dim * n_chan
                                + m_pad * out_dim + out_dim),
        ),
    )(x_t, w, b)

    out = jnp.transpose(out_t[:, :M])            # (M, out_dim)
    return out.reshape(*lead, out_dim)


if __name__ == "__main__":
    key = jax.random.PRNGKey(0)
    B, S, n_chan, out_dim = 2, 16, 4, 32
    kx, kw = jax.random.split(key)

    # inputs
    x = jax.random.normal(kx, (B, S, n_chan, 1), dtype=jnp.float32)

    # deterministic parameter init matching the module's __init__:
    #   xavier_normal_(chan_mix): std = sqrt(2 / (fan_in + fan_out)); bias.fill_(0.01)
    std = (2.0 / (n_chan + out_dim)) ** 0.5
    chan_mix = std * jax.random.normal(kw, (out_dim, n_chan), dtype=jnp.float32)
    bias = jnp.full((out_dim,), 0.01, dtype=jnp.float32)

    out = channel_mix(x, chan_mix, bias)
    out = jax.block_until_ready(out)

    # pure-JAX reference with the exact PyTorch broadcasting semantics
    ref = (x * chan_mix.T).sum(-2) + bias
    assert out.shape == (B, S, out_dim)
    assert jnp.allclose(out, ref, atol=1e-5, rtol=1e-5), "kernel/reference mismatch"

    # extra check: multi-tile grid + tail padding (M=300, TM=128 -> grid of 3)
    x2 = jax.random.normal(jax.random.PRNGKey(1), (300, n_chan, 1), dtype=jnp.float32)
    out2 = jax.block_until_ready(channel_mix(x2, chan_mix, bias, block_m=128))
    ref2 = (x2 * chan_mix.T).sum(-2) + bias
    assert out2.shape == (300, out_dim)
    assert jnp.allclose(out2, ref2, atol=1e-5, rtol=1e-5), "tiled kernel mismatch"

    print("KERNEL_OK")
</pallas_src>

<mosaic_0001>
module attributes {stable_mosaic.version = 11 : i64} {
  func.func @_channel_mix_kernel(%arg0: i32, %arg1: memref<4x128xf32, #tpu.memory_space<vmem>>, %arg2: memref<32x4xf32, #tpu.memory_space<vmem>>, %arg3: memref<32x1xf32, #tpu.memory_space<vmem>>, %arg4: memref<32x128xf32, #tpu.memory_space<vmem>>) attributes {dimension_semantics = [#tpu.dimension_semantics<parallel>], iteration_bounds = array<i64: 1>, scalar_prefetch = 0 : i64, scratch_operands = 0 : i64, tpu.core_type = #tpu.core_type<tc>, window_params = [{transform_indices = @transform_0, window_bounds = array<i64: 4, 128>}, {pipeline_mode = #tpu.pipeline_mode<synchronous>, transform_indices = @transform_1, window_bounds = array<i64: 32, 4>}, {pipeline_mode = #tpu.pipeline_mode<synchronous>, transform_indices = @transform_2, window_bounds = array<i64: 32, 1>}, {transform_indices = @transform_3, window_bounds = array<i64: 32, 128>}]} {
    %c0 = arith.constant 0 : index
    %c0_0 = arith.constant 0 : index
    %0 = vector.load %arg1[%c0, %c0_0] : memref<4x128xf32, #tpu.memory_space<vmem>>, vector<4x128xf32>
    %c0_1 = arith.constant 0 : index
    %c0_2 = arith.constant 0 : index
    %1 = vector.load %arg2[%c0_1, %c0_2] : memref<32x4xf32, #tpu.memory_space<vmem>>, vector<32x4xf32>
    %2 = vector.extract_strided_slice %1 {offsets = [0, 0], sizes = [32, 1], strides = [1, 1]} : vector<32x4xf32> to vector<32x1xf32>
    %3 = vector.extract_strided_slice %0 {offsets = [0, 0], sizes = [1, 128], strides = [1, 1]} : vector<4x128xf32> to vector<1x128xf32>
    %4 = vector.broadcast %2 : vector<32x1xf32> to vector<32x128xf32>
    %5 = vector.broadcast %3 : vector<1x128xf32> to vector<32x128xf32>
    %6 = arith.mulf %4, %5 : vector<32x128xf32>
    %7 = vector.extract_strided_slice %1 {offsets = [0, 1], sizes = [32, 1], strides = [1, 1]} : vector<32x4xf32> to vector<32x1xf32>
    %8 = vector.extract_strided_slice %0 {offsets = [1, 0], sizes = [1, 128], strides = [1, 1]} : vector<4x128xf32> to vector<1x128xf32>
    %9 = vector.broadcast %7 : vector<32x1xf32> to vector<32x128xf32>
    %10 = vector.broadcast %8 : vector<1x128xf32> to vector<32x128xf32>
    %11 = arith.mulf %9, %10 : vector<32x128xf32>
    %12 = arith.addf %6, %11 : vector<32x128xf32>
    %13 = vector.extract_strided_slice %1 {offsets = [0, 2], sizes = [32, 1], strides = [1, 1]} : vector<32x4xf32> to vector<32x1xf32>
    %14 = vector.extract_strided_slice %0 {offsets = [2, 0], sizes = [1, 128], strides = [1, 1]} : vector<4x128xf32> to vector<1x128xf32>
    %15 = vector.broadcast %13 : vector<32x1xf32> to vector<32x128xf32>
    %16 = vector.broadcast %14 : vector<1x128xf32> to vector<32x128xf32>
    %17 = arith.mulf %15, %16 : vector<32x128xf32>
    %18 = arith.addf %12, %17 : vector<32x128xf32>
    %19 = vector.extract_strided_slice %1 {offsets = [0, 3], sizes = [32, 1], strides = [1, 1]} : vector<32x4xf32> to vector<32x1xf32>
    %20 = vector.extract_strided_slice %0 {offsets = [3, 0], sizes = [1, 128], strides = [1, 1]} : vector<4x128xf32> to vector<1x128xf32>
    %21 = vector.broadcast %19 : vector<32x1xf32> to vector<32x128xf32>
    %22 = vector.broadcast %20 : vector<1x128xf32> to vector<32x128xf32>
    %23 = arith.mulf %21, %22 : vector<32x128xf32>
    %24 = arith.addf %18, %23 : vector<32x128xf32>
    %c0_3 = arith.constant 0 : index
    %c0_4 = arith.constant 0 : index
    %25 = vector.load %arg3[%c0_3, %c0_4] : memref<32x1xf32, #tpu.memory_space<vmem>>, vector<32x1xf32>
    %26 = vector.broadcast %25 : vector<32x1xf32> to vector<32x128xf32>
    %27 = arith.addf %24, %26 : vector<32x128xf32>
    %c0_5 = arith.constant 0 : index
    %c0_6 = arith.constant 0 : index
    %28 = vector.load %arg4[%c0_5, %c0_6] : memref<32x128xf32, #tpu.memory_space<vmem>>, vector<32x128xf32>
    tpu.vector_store %arg4[%c0_5, %c0_6], %27 {strides = array<i32>} : memref<32x128xf32, #tpu.memory_space<vmem>>, vector<32x128xf32>,
    return
  }
  func.func @transform_0(%arg0: i32) -> (i32, i32) {
    %c0_i32 = arith.constant 0 : i32
    %c0_i32_0 = arith.constant 0 : i32
    return %c0_i32, %arg0 : i32, i32
  }
  func.func @transform_1(%arg0: i32) -> (i32, i32) {
    %c0_i32 = arith.constant 0 : i32
    %c0_i32_0 = arith.constant 0 : i32
    %c0_i32_1 = arith.constant 0 : i32
    return %c0_i32, %c0_i32_0 : i32, i32
  }
  func.func @transform_2(%arg0: i32) -> (i32, i32) {
    %c0_i32 = arith.constant 0 : i32
    %c0_i32_0 = arith.constant 0 : i32
    %c0_i32_1 = arith.constant 0 : i32
    return %c0_i32, %c0_i32_0 : i32, i32
  }
  func.func @transform_3(%arg0: i32) -> (i32, i32) {
    %c0_i32 = arith.constant 0 : i32
    %c0_i32_0 = arith.constant 0 : i32
    return %c0_i32, %arg0 : i32, i32
  }
}

</mosaic_0001>

<bundles_post_ra>
// kernel: tpu_custom_call.1
= control target key start
LH: loop header
LB: loop body
LE: loop exit
PB: predicated region body
PF: predicated region fallthrough
CT: control target
= control target key end

     0   :  { %v219_v2 = vmov 0   ;;  %s276_s0 = inlined_call_operand.vmem [shape: f32[4,128], index: 0, kind: input, shape index: {}]   ;;  %s277_s1 = inlined_call_operand.vmem [shape: f32[32,4], index: 1, kind: input, shape index: {}]   ;;  %s278_s2 = inlined_call_operand.vmem [shape: f32[32,1], index: 2, kind: input, shape index: {}]   ;;  %s279_s3 = inlined_call_operand.hbm [shape: f32[32,128], index: 3, kind: output, shape index: {}]  }
   0x1   :  { %v18_v0 = vld [vmem:[%s277_s1 + $0x10] sm:$0xff]  ;;  %v16_v1 = vld [vmem:[%s277_s1] sm:$0xff]  ;;  %188 = vset.pattern.permute.xlu1 %v219_v2  ;;  %187 = vset.pattern.permute.xlu0 %v219_v2  ;;  %v19_v3 = vld [vmem:[%s277_s1 + $0x18] sm:$0xff] }
   0x2   :  { %32 = vperm.xlu1 %188, %v18_v0   ;;  %22 = vperm.xlu0 %187, %v16_v1   ;;  %v17_v4 = vld [vmem:[%s277_s1 + $0x8] sm:$0xff] }
   0x3   :  { %8 = vsyncpa [#allocation3], 0  ;;  %v220_v5 = vmov 1   ;;  %v221_v6 = vmov 2   ;;  %v222_v7 = vmov 3   ;;  %v133_v8 = vld [vmem:[%s278_s2 + $0x8] sm:$0xff]  ;;  %v40_v18 = vlaneseq }
   0x4   :  { %v132_v9 = vld [vmem:[%s278_s2] sm:$0xff]  ;;  %v134_v10 = vld [vmem:[%s278_s2 + $0x10] sm:$0xff]  ;;  %v135_v11 = vld [vmem:[%s278_s2 + $0x18] sm:$0xff] }
   0x5   :  { %v41_v21 = vshrl.u32 %v40_v18, 7  ;;  %v15_v27 = vld [vmem:[%s276_s0] sm:$0xf]  ;;  %s223_s0 = smov [#allocation2]  }
   0x6   :  { %37 = vperm.xlu1 %188, %v19_v3   ;;  %27 = vperm.xlu0 %187, %v17_v4   ;;  %s169_s2 = sshll.u32 %s223_s0, 4  ;;  %s170_s2 = int_to_ptr.vmem [resolvable:$true] %s169_s2 }
   0x7   :  { %v66_v22 = vsub.s32 1, %v41_v21  ;;  %v42_v25 = vsub.s32 0, %v41_v21  ;;  %v94_v26 = vsub.s32 2, %v41_v21  ;;  %v122_v35 = vsub.s32 3, %v41_v21  ;;  %s197_s29 = scalar_lea.vmem %s170_s2, 512  ;;  %p202_p1 = scmp.lt.s32.totalorder %s170_s2, %s170_s2 }
   0x8   :  { %p198_p0 = scmp.ne.s32.totalorder %s170_s2, %s197_s29  ;;  %p203_p2 = scmp.lt.s32.totalorder %s197_s29, %s197_s29 }
   0x9   :  { %v67_v28 = vrot.slane %v15_v27, %v66_v22  ;;  %v43_v31 = vrot.slane %v15_v27, %v42_v25  ;;  %v95_v32 = vrot.slane %v15_v27, %v94_v26  ;;  %v123_v42 = vrot.slane %v15_v27, %v122_v35 }
   0xa   :  { %190 = vset.pattern.permute.xlu1 %v220_v5  ;;  %189 = vset.pattern.permute.xlu0 %v220_v5  ;;  %p204_p3 = por %p203_p2, %p202_p1 }
   0xb   :  { %53 = vperm.xlu1 %190, %v17_v4   ;;  %49 = vperm.xlu0 %189, %v16_v1  }
   0xc   :  { %p205_p4 = pnand %p204_p3, %p198_p0 }
   0xf   :  { %57 = vperm.xlu1 %190, %v18_v0   ;;  %61 = vperm.xlu0 %189, %v19_v3  }
  0x13   :  { %191 = vset.pattern.permute.xlu1 %v221_v6  ;;  %192 = vset.pattern.permute.xlu0 %v221_v6 }
  0x14   :  { %77 = vperm.xlu1 %191, %v16_v1   ;;  %81 = vperm.xlu0 %192, %v17_v4  }
  0x18   :  { %85 = vperm.xlu1 %191, %v18_v0   ;;  %193 = vset.pattern.permute.xlu0 %v222_v7 }
  0x19   :  { %105 = vperm.xlu0 %193, %v16_v1  }
  0x1c   :  { %89 = vperm.xlu1 %191, %v19_v3  }
  0x1d   :  { %117 = vperm.xlu0 %193, %v19_v3  }
  0x20   :  { %194 = vset.pattern.permute.xlu1 %v222_v7 }
  0x21   :  { %109 = vperm.xlu1 %194, %v17_v4   ;;  %196 = vset.pattern.permute.xlu0 %v219_v2 }
  0x22   :  { %143 = vperm.xlu0 %196, %v133_v8  }
  0x25   :  { %113 = vperm.xlu1 %194, %v18_v0  }
  0x29   :  { %195 = vset.pattern.permute.xlu1 %v219_v2 }
  0x2a   :  { %138 = vperm.xlu1 %195, %v132_v9  }
  0x2e   :  { %148 = vperm.xlu1 %195, %v134_v10  }
  0x32   :  { %153 = vperm.xlu1 %195, %v135_v11  }
  0x7d   :  { %v33_v12 = vpop.permute.xlu1 %32  ;;  %v23_v13 = vpop.permute.xlu0 %22 }
  0x7e   :  { %v44_v38 = vmul.f32 %v43_v31, %v23_v13  ;;  %v46_v54 = vmul.f32 %v43_v31, %v33_v12 }
  0x81   :  { %v38_v14 = vpop.permute.xlu1 %37  ;;  %v28_v15 = vpop.permute.xlu0 %27 }
  0x82   :  { %v45_v33 = vmul.f32 %v43_v31, %v28_v15  ;;  %v47_v58 = vmul.f32 %v43_v31, %v38_v14 }
  0x86   :  { %v54_v16 = vpop.permute.xlu1 %53  ;;  %v50_v17 = vpop.permute.xlu0 %49 }
  0x87   :  { %v69_v34 = vmul.f32 %v67_v28, %v54_v16  ;;  %v68_v39 = vmul.f32 %v67_v28, %v50_v17 }
  0x89   :  { %v73_v41 = vadd.f32 %v69_v34, %v45_v33  ;;  %v72_v46 = vadd.f32 %v68_v39, %v44_v38 }
  0x8a   :  { %v58_v19 = vpop.permute.xlu1 %57  ;;  %v62_v20 = vpop.permute.xlu0 %61 }
  0x8b   :  { %v70_v50 = vmul.f32 %v67_v28, %v58_v19  ;;  %v71_v55 = vmul.f32 %v67_v28, %v62_v20 }
  0x8d   :  { %v74_v59 = vadd.f32 %v70_v50, %v46_v54  ;;  %v75_v0 = vadd.f32 %v71_v55, %v47_v58 }
  0x8f   :  { %v78_v23 = vpop.permute.xlu1 %77  ;;  %v82_v24 = vpop.permute.xlu0 %81 }
  0x90   :  { %v97_v37 = vmul.f32 %v95_v32, %v82_v24  ;;  %v96_v47 = vmul.f32 %v95_v32, %v78_v23 }
  0x92   :  { %v101_v44 = vadd.f32 %v97_v37, %v73_v41  ;;  %v100_v56 = vadd.f32 %v96_v47, %v72_v46 }
  0x93   :  { %v86_v29 = vpop.permute.xlu1 %85 }
  0x94   :  { %v106_v30 = vpop.permute.xlu0 %105  ;;  %v98_v57 = vmul.f32 %v95_v32, %v86_v29 }
  0x95   :  { %v124_v51 = vmul.f32 %v123_v42, %v106_v30 }
  0x96   :  { %v102_v1 = vadd.f32 %v98_v57, %v74_v59 }
  0x97   :  { %v90_v36 = vpop.permute.xlu1 %89  ;;  %v128_v62 = vadd.f32 %v124_v51, %v100_v56 }
  0x98   :  { %v118_v40 = vpop.permute.xlu0 %117  ;;  %v99_v60 = vmul.f32 %v95_v32, %v90_v36 }
  0x99   :  { %v127_v4 = vmul.f32 %v123_v42, %v118_v40 }
  0x9a   :  { %v103_v3 = vadd.f32 %v99_v60, %v75_v0 }
  0x9c   :  { %v110_v43 = vpop.permute.xlu1 %109  ;;  %v131_v8 = vadd.f32 %v127_v4, %v103_v3 }
  0x9d   :  { %v125_v45 = vmul.f32 %v123_v42, %v110_v43  ;;  %v144_v48 = vpop.permute.xlu0 %143 }
  0x9f   :  { %v129_v49 = vadd.f32 %v125_v45, %v101_v44 }
  0xa0   :  { %v114_v52 = vpop.permute.xlu1 %113 }
  0xa1   :  { %v157_v53 = vadd.f32 %v144_v48, %v129_v49  ;;  %v126_v61 = vmul.f32 %v123_v42, %v114_v52 }
  0xa3   :  { %161 = vst [vmem:[#allocation2 + $0x8] sm:$0xff] %v157_v53  ;;  %v130_v5 = vadd.f32 %v126_v61, %v102_v1 }
  0xa5   :  { %v139_v63 = vpop.permute.xlu1 %138 }
  0xa6   :  { %v156_v2 = vadd.f32 %v139_v63, %v128_v62 }
  0xa8   :  { %160 = vst [vmem:[#allocation2] sm:$0xff] %v156_v2 }
  0xa9   :  { %v149_v6 = vpop.permute.xlu1 %148 }
  0xaa   :  { %v158_v7 = vadd.f32 %v149_v6, %v130_v5 }
  0xac   :  { %162 = vst [vmem:[#allocation2 + $0x10] sm:$0xff] %v158_v7 }
  0xad   :  { %v154_v9 = vpop.permute.xlu1 %153 }
  0xae   :  { %v159_v10 = vadd.f32 %v154_v9, %v131_v8 }
  0xb0   :  { %163 = vst [vmem:[#allocation2 + $0x18] sm:$0xff] %v159_v10 }
  0xb1   :  { %208 = shalt.err (!%p205_p4)
}
  0xb2   :  { %s224_s30 = smov 128   ;;  %s225_s4 = smov 8  }
  0xb3   :  { %175 = dma.vmem_to_hbm [thread:$0]  %s170_s2, 512, %s279_s3, [#allocation3], %s224_s30, %s224_s30, %s225_s4  }
  0xb4   :  { %217 = dma.done.wait [#allocation3], 512  }
  0xb5   :  { %218 = vsyncadd [#allocation3], 4294966784 }
  0xb6   :  { %179 = vsyncpa [#allocation3], 1 }

</bundles_post_ra>
